<compile_context>
chip_gen: v6e
topology: v6e:2x2x1
jax: 0.10.0
libtpu: 0.0.40
codegen_flags: <defaults>
</compile_context>

<pallas_src>
import functools

import jax
import jax.numpy as jnp
from jax import lax
from jax.experimental import pallas as pl
from jax.experimental.pallas import tpu as pltpu

LANES = 128
SUBLANES = 8
MAX_CHUNK_ROWS = 512  # in-kernel VALU working-set chunk (rows)


def _cdiv(a, b):
    return -(-a // b)


def _ceil_to(a, b):
    return _cdiv(a, b) * b


def _device_defaults():
    """Generation-aware (block_rows, num_shards)."""
    try:
        kind = jax.devices()[0].device_kind.lower()
    except Exception:
        kind = ""
    if "v7" in kind:
        return 4096, 2   # 2 TCs; 2 inputs x 2 bufs x 2 MiB = 8 MiB per core
    if "v6" in kind:
        return 8192, 1   # 16 MiB double-buffered working set < 32 MiB scoped VMEM
    if "v5" in kind:
        return 4096, 1   # fits v5e's 16 MiB default scoped VMEM
    return 4096, 1


def _content_loss_kernel(x_ref, t_ref, o_ref, *, weight, rows, blk, chunk,
                         blocks_per_shard, mask_needed):
    """Accumulate per-shard partial sums of (x*weight - target)^2 into (8,128)."""
    i = pl.program_id(1)  # reduction step within this shard

    @pl.when(i == 0)
    def _():
        o_ref[...] = jnp.zeros_like(o_ref)

    n_chunks = blk // chunk
    w = jnp.float32(weight)

    def chunk_body(masked, g):
        def body(c, acc):
            r0 = c * chunk
            start = pl.multiple_of(r0, chunk)
            xf = x_ref[pl.ds(start, chunk), :].astype(jnp.float32)
            tf = t_ref[pl.ds(start, chunk), :].astype(jnp.float32)
            diff = xf * w - tf
            sq = diff * diff                                   # (chunk, 128)
            if masked:
                # Zero out rows past the end of the (unpadded) array.
                row_ids = (g * blk + r0
                           + lax.broadcasted_iota(jnp.int32, (chunk, LANES), 0))
                sq = jnp.where(row_ids < rows, sq, jnp.float32(0.0))
            # Fold onto an (8,128) vreg-shaped accumulator: pure VPU adds,
            # no cross-lane (XLU) reduction in the hot loop.
            return acc + sq.reshape(-1, SUBLANES, LANES).sum(axis=0)
        return body

    zero = jnp.zeros((SUBLANES, LANES), jnp.float32)

    if mask_needed:
        g = pl.program_id(0) * blocks_per_shard + i            # logical block index
        is_full = (g + 1) * blk <= rows

        @pl.when(is_full)
        def _():
            acc = lax.fori_loop(0, n_chunks, chunk_body(False, g), zero, unroll=True)
            o_ref[...] += acc[None]

        @pl.when(jnp.logical_not(is_full))
        def _():
            acc = lax.fori_loop(0, n_chunks, chunk_body(True, g), zero, unroll=True)
            o_ref[...] += acc[None]
    else:
        acc = lax.fori_loop(0, n_chunks, chunk_body(False, 0), zero, unroll=True)
        o_ref[...] += acc[None]


def content_loss_forward(x, target_scaled, weight, *, block_rows=None, num_shards=None):
    """Returns (output, loss) mirroring ContentLoss.forward.

    x:             feature map, any shape (e.g. (B, C, H, W))
    target_scaled: same shape, already equal to target.detach() * weight
    weight:        python float (compile-time constant per ContentLoss instance)
    """
    assert x.shape == target_scaled.shape
    n = x.size

    auto_rows, auto_shards = _device_defaults()
    if block_rows is None:
        block_rows = auto_rows
    if num_shards is None:
        num_shards = auto_shards

    flat_x = x.reshape(-1)
    flat_t = target_scaled.reshape(-1)

    # Single lane-tail pad (<=127 elems) only when n is not 128-aligned; padded
    # zeros contribute (0*w - 0)^2 = 0.  No row padding is ever issued.
    rows = _cdiv(n, LANES)
    lane_pad = rows * LANES - n
    if lane_pad:
        flat_x = jnp.pad(flat_x, (0, lane_pad))
        flat_t = jnp.pad(flat_t, (0, lane_pad))

    x2 = flat_x.reshape(rows, LANES)
    t2 = flat_t.reshape(rows, LANES)

    # Block / chunk selection: blk is a multiple of the chunk size (which is a
    # multiple of 8, preserving the (-1, 8, 128) reshape invariant in-kernel).
    blk = min(int(block_rows), _ceil_to(rows, SUBLANES))
    blk = _ceil_to(blk, SUBLANES)
    chunk = min(MAX_CHUNK_ROWS, blk)
    blk = max(chunk, (blk // chunk) * chunk)

    blocks_total = _cdiv(rows, blk)
    shards = max(1, min(int(num_shards), blocks_total))
    blocks_per_shard = _cdiv(blocks_total, shards)

    # Masking is only emitted if some grid step can cover rows past the array end.
    mask_needed = (shards * blocks_per_shard * blk) != rows

    if shards * blocks_per_shard == blocks_total:
        def in_map(s, i, _bps=blocks_per_shard):
            return (s * _bps + i, 0)
    else:
        # Uneven split: clamp overflow steps to the last valid block; their
        # contribution is fully masked to zero in-kernel.
        def in_map(s, i, _bps=blocks_per_shard, _last=blocks_total - 1):
            return (jnp.minimum(s * _bps + i, _last), 0)

    kernel = functools.partial(
        _content_loss_kernel,
        weight=float(weight), rows=rows, blk=blk, chunk=chunk,
        blocks_per_shard=blocks_per_shard, mask_needed=mask_needed)

    bytes_accessed = int(n * (x.dtype.itemsize + target_scaled.dtype.itemsize)
                         + shards * SUBLANES * LANES * 4)
    cost = pl.CostEstimate(flops=3 * n, transcendentals=0,
                           bytes_accessed=bytes_accessed)

    partials = pl.pallas_call(
        kernel,
        out_shape=jax.ShapeDtypeStruct((shards, SUBLANES, LANES), jnp.float32),
        grid_spec=pltpu.PrefetchScalarGridSpec(
            num_scalar_prefetch=0,
            grid=(shards, blocks_per_shard),
            in_specs=[
                pl.BlockSpec((blk, LANES), in_map),
                pl.BlockSpec((blk, LANES), in_map),
            ],
            out_specs=pl.BlockSpec((1, SUBLANES, LANES), lambda s, i: (s, 0, 0)),
        ),
        compiler_params=pltpu.CompilerParams(
            dimension_semantics=("parallel", "arbitrary")),
        cost_estimate=cost,
    )(x2, t2)

    loss = partials.sum() / jnp.float32(n)   # MSELoss default reduction='mean'
    output = x                               # module returns the input unchanged
    return output, loss


if __name__ == "__main__":
    key = jax.random.PRNGKey(0)
    k1, k2, k3, k4 = jax.random.split(key, 4)

    weight = 0.75

    # Small ContentLoss-style feature map (B, C, H, W): 128-aligned, single block.
    B, C, H, W = 2, 4, 16, 16
    x = jax.random.normal(k1, (B, C, H, W), dtype=jnp.float32)
    target = jax.random.normal(k2, (B, C, H, W), dtype=jnp.float32)
    target_scaled = target * weight  # ContentLoss.__init__: target.detach() * weight

    output, loss = content_loss_forward(x, target_scaled, weight)
    output, loss = jax.block_until_ready((output, loss))

    ref_loss = jnp.mean((x * weight - target_scaled) ** 2)
    assert jnp.allclose(loss, ref_loss, rtol=1e-5, atol=1e-6), (loss, ref_loss)
    assert jnp.array_equal(output, x)

    # Ragged case: exercises the lane-tail pad, partial last block (in-kernel row
    # mask), and an uneven 2-shard split (clamped index map + fully-masked step).
    B2, C2, H2, W2 = 3, 5, 17, 19
    x_b = jax.random.normal(k3, (B2, C2, H2, W2), dtype=jnp.float32)
    t_b = jax.random.normal(k4, (B2, C2, H2, W2), dtype=jnp.float32) * weight
    out_b, loss_b = content_loss_forward(x_b, t_b, weight, block_rows=16, num_shards=2)
    out_b, loss_b = jax.block_until_ready((out_b, loss_b))
    ref_b = jnp.mean((x_b * weight - t_b) ** 2)
    assert jnp.allclose(loss_b, ref_b, rtol=1e-5, atol=1e-6), (loss_b, ref_b)
    assert jnp.array_equal(out_b, x_b)

    print("KERNEL_OK")
</pallas_src>

<mosaic_0001>
module attributes {stable_mosaic.version = 11 : i64} {
  func.func @_content_loss_kernel(%arg0: i32, %arg1: i32, %arg2: memref<16x128xf32, #tpu.memory_space<vmem>>, %arg3: memref<16x128xf32, #tpu.memory_space<vmem>>, %arg4: memref<1x8x128xf32, #tpu.memory_space<vmem>>) attributes {dimension_semantics = [#tpu.dimension_semantics<parallel>, #tpu.dimension_semantics<arbitrary>], iteration_bounds = array<i64: 1, 1>, scalar_prefetch = 0 : i64, scratch_operands = 0 : i64, tpu.core_type = #tpu.core_type<tc>, window_params = [{transform_indices = @transform_0, window_bounds = array<i64: 16, 128>}, {transform_indices = @transform_1, window_bounds = array<i64: 16, 128>}, {transform_indices = @transform_2, window_bounds = array<i64: 1, 8, 128>}]} {
    %c0_i32 = arith.constant 0 : i32
    %0 = arith.cmpi eq, %arg1, %c0_i32 : i32
    %1 = arith.extui %0 : i1 to i32
    %c0_i32_0 = arith.constant 0 : i32
    %2 = arith.cmpi ne, %1, %c0_i32_0 : i32
    scf.if %2 {
      %cst_11 = arith.constant 0.000000e+00 : f32
      %21 = vector.broadcast %cst_11 : f32 to vector<1x8x128xf32>
      %c0_12 = arith.constant 0 : index
      %c0_13 = arith.constant 0 : index
      %c0_14 = arith.constant 0 : index
      %22 = vector.load %arg4[%c0_12, %c0_13, %c0_14] : memref<1x8x128xf32, #tpu.memory_space<vmem>>, vector<1x8x128xf32>
      tpu.vector_store %arg4[%c0_12, %c0_13, %c0_14], %21 {strides = array<i32>} : memref<1x8x128xf32, #tpu.memory_space<vmem>>, vector<1x8x128xf32>,
    } else {
    }
    %cst = arith.constant 0.000000e+00 : f32
    %3 = vector.broadcast %cst : f32 to vector<8x128xf32>
    %cst_1 = arith.constant 7.500000e-01 : f32
    %c0_i32_2 = arith.constant 0 : i32
    %c16_i32 = arith.constant 16 : i32
    %4 = arith.muli %c0_i32_2, %c16_i32 : i32
    %5 = tpu.assume_multiple %4, 16 : i32
    %6 = arith.index_cast %5 : i32 to index
    %c0 = arith.constant 0 : index
    %7 = vector.load %arg2[%6, %c0] : memref<16x128xf32, #tpu.memory_space<vmem>>, vector<16x128xf32>
    %8 = arith.index_cast %5 : i32 to index
    %c0_3 = arith.constant 0 : index
    %9 = vector.load %arg3[%8, %c0_3] : memref<16x128xf32, #tpu.memory_space<vmem>>, vector<16x128xf32>
    %10 = vector.broadcast %cst_1 : f32 to vector<16x128xf32>
    %11 = arith.mulf %7, %10 : vector<16x128xf32>
    %12 = arith.subf %11, %9 : vector<16x128xf32>
    %13 = arith.mulf %12, %12 : vector<16x128xf32>
    %14 = vector.shape_cast %13 : vector<16x128xf32> to vector<2x8x128xf32>
    %cst_4 = arith.constant dense<0.000000e+00> : vector<8x128xf32>
    %15 = vector.multi_reduction <add>, %14, %cst_4 [0] : vector<2x8x128xf32> to vector<8x128xf32>
    %16 = arith.addf %3, %15 : vector<8x128xf32>
    %c1_i32 = arith.constant 1 : i32
    %c0_5 = arith.constant 0 : index
    %c0_6 = arith.constant 0 : index
    %c0_7 = arith.constant 0 : index
    %17 = vector.load %arg4[%c0_5, %c0_6, %c0_7] : memref<1x8x128xf32, #tpu.memory_space<vmem>>, vector<1x8x128xf32>
    %18 = vector.shape_cast %16 : vector<8x128xf32> to vector<1x8x128xf32>
    %19 = arith.addf %17, %18 : vector<1x8x128xf32>
    %c0_8 = arith.constant 0 : index
    %c0_9 = arith.constant 0 : index
    %c0_10 = arith.constant 0 : index
    %20 = vector.load %arg4[%c0_8, %c0_9, %c0_10] : memref<1x8x128xf32, #tpu.memory_space<vmem>>, vector<1x8x128xf32>
    tpu.vector_store %arg4[%c0_8, %c0_9, %c0_10], %19 {strides = array<i32>} : memref<1x8x128xf32, #tpu.memory_space<vmem>>, vector<1x8x128xf32>,
    return
  }
  func.func @transform_0(%arg0: i32, %arg1: i32) -> (i32, i32) {
    %c1_i32 = arith.constant 1 : i32
    %0 = arith.muli %arg0, %c1_i32 : i32
    %1 = arith.addi %0, %arg1 : i32
    %c0_i32 = arith.constant 0 : i32
    %c0_i32_0 = arith.constant 0 : i32
    return %1, %c0_i32 : i32, i32
  }
  func.func @transform_1(%arg0: i32, %arg1: i32) -> (i32, i32) {
    %c1_i32 = arith.constant 1 : i32
    %0 = arith.muli %arg0, %c1_i32 : i32
    %1 = arith.addi %0, %arg1 : i32
    %c0_i32 = arith.constant 0 : i32
    %c0_i32_0 = arith.constant 0 : i32
    return %1, %c0_i32 : i32, i32
  }
  func.func @transform_2(%arg0: i32, %arg1: i32) -> (i32, i32, i32) {
    %c0_i32 = arith.constant 0 : i32
    %c0_i32_0 = arith.constant 0 : i32
    %c0_i32_1 = arith.constant 0 : i32
    return %arg0, %c0_i32, %c0_i32_0 : i32, i32, i32
  }
}

</mosaic_0001>

<bundles_post_ra>
// kernel: tpu_custom_call.1
= control target key start
LH: loop header
LB: loop body
LE: loop exit
PB: predicated region body
PF: predicated region fallthrough
CT: control target
= control target key end

     0   :  { %7 = vsyncpa [#allocation3], 0  ;;  %s189_s0 = inlined_call_operand.hbm [shape: f32[16,128], index: 0, kind: input, shape index: {}]   ;;  %s190_s1 = inlined_call_operand.hbm [shape: f32[16,128], index: 1, kind: input, shape index: {}]   ;;  %s191_s2 = inlined_call_operand.hbm [shape: f32[1,8,128], index: 2, kind: output, shape index: {}]  }
   0x1   :  { %8 = vsyncpa [#allocation6], 0 }
   0x2   :  { %9 = vsyncpa [#allocation4], 0  ;;  %s160_s9 = smov [#allocation2]  }
   0x3   :  { %s19_s10 = sshll.u32 %s160_s9, 4  ;;  %s20_s10 = int_to_ptr.vmem [resolvable:$true] %s19_s10 }
   0x4   :  { %s102_s11 = scalar_lea.vmem %s20_s10, 256  ;;  %p107_p1 = scmp.lt.s32.totalorder %s20_s10, %s20_s10 }
   0x5   :  { %p103_p0 = scmp.ne.s32.totalorder %s20_s10, %s102_s11  ;;  %p108_p2 = scmp.lt.s32.totalorder %s102_s11, %s102_s11 }
   0x7   :  { %p109_p3 = por %p108_p2, %p107_p1 }
   0x9   :  { %p110_p4 = pnand %p109_p3, %p103_p0 }
   0xb   :  { %113 = shalt.err (!%p110_p4)
}
   0xc   :  { %s161_s12 = smov 128   ;;  %s162_s13 = smov 8  }
   0xd   :  { %25 = dma.hbm_to_vmem [thread:$0]  %s189_s0, 256, %s20_s10, [#allocation3], %s161_s12, %s161_s12, %s162_s13  }
   0xe   :  { %s163_s16 = smov [#allocation5]  }
   0xf   :  { %s35_s17 = sshll.u32 %s163_s16, 4  ;;  %s36_s17 = int_to_ptr.vmem [resolvable:$true] %s35_s17 }
  0x10   :  { %s122_s18 = scalar_lea.vmem %s36_s17, 256  ;;  %p127_p6 = scmp.lt.s32.totalorder %s36_s17, %s36_s17 }
  0x11   :  { %p123_p5 = scmp.ne.s32.totalorder %s36_s17, %s122_s18  ;;  %p128_p7 = scmp.lt.s32.totalorder %s122_s18, %s122_s18 }
  0x13   :  { %p129_p8 = por %p128_p7, %p127_p6 }
  0x15   :  { %p130_p9 = pnand %p129_p8, %p123_p5 }
  0x17   :  { %133 = shalt.err (!%p130_p9)
}
  0x18   :  { %41 = dma.hbm_to_vmem [thread:$0]  %s190_s1, 256, %s36_s17, [#allocation6], %s161_s12, %s161_s12, %s162_s13  }
  0x19   :  { %154 = dma.done.wait [#allocation3], 256  }
  0x1a   :  { %155 = vsyncadd [#allocation3], 4294967040 }
  0x1b   :  { %156 = dma.done.wait [#allocation6], 256  }
  0x1c   :  { %157 = vsyncadd [#allocation6], 4294967040  ;;  %v57_v0 = vld [vmem:[#allocation2] sm:$0xff]  ;;  %v58_v1 = vld [vmem:[#allocation2 + $0x8] sm:$0xff]  ;;  %s164_s0 = smov [#allocation7]  }
  0x1d   :  { %v59_v2 = vld [vmem:[#allocation5] sm:$0xff]  ;;  %v60_v3 = vld [vmem:[#allocation5 + $0x8] sm:$0xff]  ;;  %v61_v4 = vmul.f32 0.75, %v57_v0  ;;  %v62_v5 = vmul.f32 0.75, %v58_v1  ;;  %s78_s21 = sshll.u32 %s164_s0, 4  ;;  %s79_s21 = int_to_ptr.vmem [resolvable:$true] %s78_s21 }
  0x1e   :  { %s134_s1 = scalar_lea.vmem %s79_s21, 128  ;;  %p139_p11 = scmp.lt.s32.totalorder %s79_s21, %s79_s21 }
  0x1f   :  { %v63_v6 = vsub.f32 %v61_v4, %v59_v2  ;;  %v64_v7 = vsub.f32 %v62_v5, %v60_v3  ;;  %p135_p10 = scmp.ne.s32.totalorder %s79_s21, %s134_s1  ;;  %p140_p12 = scmp.lt.s32.totalorder %s134_s1, %s134_s1 }
  0x21   :  { %v65_v8 = vmul.f32 %v63_v6, %v63_v6  ;;  %v66_v9 = vmul.f32 %v64_v7, %v64_v7  ;;  %p141_p13 = por %p140_p12, %p139_p11 }
  0x23   :  { %v67_v10 = vadd.f32 %v66_v9, %v65_v8  ;;  %p142_p0 = pnand %p141_p13, %p135_p10 }
  0x25   :  { %71 = vst [vmem:[#allocation7] sm:$0xff] %v67_v10 }
  0x26   :  { %145 = shalt.err (!%p142_p0)
}
  0x27   :  { %81 = dma.vmem_to_hbm [thread:$0]  %s79_s21, 128, %s191_s2, [#allocation4]  }
  0x28   :  { %158 = dma.done.wait [#allocation4], 128  }
  0x29   :  { %159 = vsyncadd [#allocation4], 4294967168 }
  0x2a   :  { %85 = vsyncpa [#allocation3], 1 }
  0x2b   :  { %86 = vsyncpa [#allocation6], 1 }
  0x2c   :  { %87 = vsyncpa [#allocation4], 1 }

</bundles_post_ra>
